<compile_context>
chip_gen: v5e
topology: v5e:2x2
jax: 0.10.0
libtpu: 0.0.40
codegen_flags: <defaults>
</compile_context>

<pallas_src>
import math

import jax
import jax.numpy as jnp
from jax.experimental import pallas as pl
from jax.experimental.pallas import tpu as pltpu

EPS = 1e-05

_LANES = 128
_SUBLANES = 8
_MAX_SLAB_COLS = 8 * _LANES            # widest lane-dense repack slab (1024 lanes)


# ---------------------------------------------------------------------------
# Chip-gated budgets: v7x (64 MiB physical VMEM) -> 2 MiB blocks / 32 MiB scoped;
# v5e/v6e (128 MiB physical VMEM) -> 4 MiB blocks / 64 MiB scoped.
# ---------------------------------------------------------------------------
def _chip_budgets():
    target, limit = 2 * 1024 * 1024, 32 * 1024 * 1024
    try:
        info = pltpu.get_tpu_info()
        vmem = getattr(info, "vmem_capacity_bytes", None)
        if vmem is not None and vmem >= 128 * 1024 * 1024:
            target, limit = 4 * 1024 * 1024, 64 * 1024 * 1024
    except Exception:
        pass                                    # fall back to the v7x-safe envelope
    return target, limit


_TARGET_TILE_BYTES, _VMEM_LIMIT_BYTES = _chip_budgets()


# ---------------------------------------------------------------------------
# Pallas kernels
# ---------------------------------------------------------------------------
def _norm_affine_kernel(w_ref, b_ref, x_ref, o_ref):
    # out = f(x * w + b), f = identity.  x_ref already holds exactly the columns we need.
    o_ref[...] = (x_ref[...] * w_ref[0] + b_ref[0]).astype(o_ref.dtype)


def _norm_tail_fused_kernel(w_ref, b_ref, x_ref, o_ref):
    # Fallback when the tail window isn't 128-aligned: x_ref carries the full seq width;
    # slice the *Ref* (not the loaded value) so only the trailing columns hit the vld path.
    seq = x_ref.shape[-1]
    tail = o_ref.shape[-1]
    x_tail = x_ref[:, pl.ds(seq - tail, tail)]
    o_ref[...] = (x_tail * w_ref[0] + b_ref[0]).astype(o_ref.dtype)


def _denorm_affine_kernel(w_ref, b_ref, x_ref, o_ref):
    # out = (fi(x) - b) / (w + eps*eps), fi = identity.
    # Hoist the reciprocal to a single scalar op; the vector path is then sub + mul only.
    inv = 1.0 / (w_ref[0] + EPS * EPS)          # exact scalar reciprocal for accuracy
    o_ref[...] = ((x_ref[...] - b_ref[0]) * inv).astype(o_ref.dtype)


# ---------------------------------------------------------------------------
# Launch helpers
# ---------------------------------------------------------------------------
def _cparams(n_grid_axes):
    return pltpu.CompilerParams(
        dimension_semantics=("parallel",) * n_grid_axes,   # elementwise: every axis parallel
        vmem_limit_bytes=_VMEM_LIMIT_BYTES,
    )


def _choose_row_tile(n_rows, bytes_per_row):
    """Row tile sized from the bytes actually DMA'd per step (input + output widths).

    Big enough to hide the ~0.35 us/step grid overhead, small enough that double-buffered
    in + out fits the scoped VMEM budget; keeps >= ~4 grid steps on larger inputs so the
    pipeline has something to overlap and the row axis can shard across v7x's 2 TensorCores.
    """
    rows = max(1, _TARGET_TILE_BYTES // max(1, bytes_per_row))
    if n_rows > 4 * _SUBLANES:
        rows = min(rows, (n_rows + 3) // 4)     # guarantee >= ~4 grid steps
    if rows >= n_rows:
        return n_rows                           # full extent: always a legal block dim
    rows = max(_SUBLANES, (rows // _SUBLANES) * _SUBLANES)   # sublane (8) alignment
    return min(rows, n_rows)


def _repack_lane_dense(x2d):
    """Row-major reshape (free, layout preserving) to a lane-dense slab when possible.

    Turns masked vst.msk partial stores into full-width vst's when the last dim < 128."""
    rows, cols = x2d.shape
    if cols % _LANES == 0:
        return x2d
    total = rows * cols
    if total % _LANES != 0:
        # TODO(synk): could pad the last dim to a lane multiple (pad/run/slice); we fall
        # back to masked loads/stores for these odd shapes instead.
        return x2d
    new_cols = _LANES
    while new_cols * 2 <= _MAX_SLAB_COLS and total % (new_cols * 2) == 0:
        new_cols *= 2
    return x2d.reshape(total // new_cols, new_cols)


def _run_dense(kernel_fn, x2d, weight, bias, tile_rows=None):
    """Row-tiled elementwise affine kernel over a full-width 2-D slab."""
    rows, cols = x2d.shape
    if tile_rows is None:
        tile_rows = _choose_row_tile(rows, 2 * cols * x2d.dtype.itemsize)
    grid = (pl.cdiv(rows, tile_rows),)
    return pl.pallas_call(
        kernel_fn,
        out_shape=jax.ShapeDtypeStruct((rows, cols), x2d.dtype),
        grid=grid,
        in_specs=[
            pl.BlockSpec(memory_space=pltpu.SMEM),              # affine_weight, shape (1,)
            pl.BlockSpec(memory_space=pltpu.SMEM),              # affine_bias,   shape (1,)
            pl.BlockSpec((tile_rows, cols), lambda i: (i, 0)),
        ],
        out_specs=pl.BlockSpec((tile_rows, cols), lambda i: (i, 0)),
        compiler_params=_cparams(1),
    )(weight, bias, x2d)


def _normalize(x, tail, weight, bias, tile_rows=None):
    rows, seq = x.shape
    tail = min(tail, seq)                 # torch's x[:, -tail:] clamps when tail >= seq
    off = seq - tail

    # --- tail == seq: plain affine, lane-dense repacked if the width is lane-sparse ---
    if off == 0:
        x2d = _repack_lane_dense(x)
        out = _run_dense(_norm_affine_kernel, x2d, weight, bias, tile_rows)
        return out.reshape(rows, tail)

    # --- narrowed-DMA path: only the trailing `tail` columns are read from HBM ---
    if tail % _LANES == 0 and off % _LANES == 0:
        cb = math.gcd(tail, off)          # multiple of 128; divides both tail and offset
        ncol = tail // cb
        col0 = off // cb                  # first column block of the tail window
        if tile_rows is None:
            tr = _choose_row_tile(rows, 2 * cb * x.dtype.itemsize)
        else:
            tr = tile_rows
        grid = (pl.cdiv(rows, tr), ncol)
        return pl.pallas_call(
            _norm_affine_kernel,
            out_shape=jax.ShapeDtypeStruct((rows, tail), x.dtype),
            grid=grid,
            in_specs=[
                pl.BlockSpec(memory_space=pltpu.SMEM),
                pl.BlockSpec(memory_space=pltpu.SMEM),
                pl.BlockSpec((tr, cb), lambda i, j: (i, col0 + j)),
            ],
            out_specs=pl.BlockSpec((tr, cb), lambda i, j: (i, j)),
            compiler_params=_cparams(2),
        )(weight, bias, x)

    # --- general fallback: fused full-width read, Ref-sliced tail inside the kernel ---
    if tile_rows is None:
        tr = _choose_row_tile(rows, (seq + tail) * x.dtype.itemsize)
    else:
        tr = tile_rows
    grid = (pl.cdiv(rows, tr),)
    return pl.pallas_call(
        _norm_tail_fused_kernel,
        out_shape=jax.ShapeDtypeStruct((rows, tail), x.dtype),
        grid=grid,
        in_specs=[
            pl.BlockSpec(memory_space=pltpu.SMEM),
            pl.BlockSpec(memory_space=pltpu.SMEM),
            pl.BlockSpec((tr, seq), lambda i: (i, 0)),
        ],
        out_specs=pl.BlockSpec((tr, tail), lambda i: (i, 0)),
        compiler_params=_cparams(1),
    )(weight, bias, x)


def _denormalize(x, weight, bias, tile_rows=None):
    orig_shape = x.shape
    x2d = x.reshape(-1, orig_shape[-1])
    x2d = _repack_lane_dense(x2d)         # present a lane-dense slab for full-width vst's
    out = _run_dense(_denorm_affine_kernel, x2d, weight, bias, tile_rows)
    return out.reshape(orig_shape)


# ---------------------------------------------------------------------------
# Module-equivalent wrapper
# ---------------------------------------------------------------------------
class TransformNoZ:
    """JAX/Pallas port of the PyTorch TransformNoZ module (identity mapper)."""

    def __init__(self, tail: int, eps: float = EPS):
        self.tail = tail
        self.eps = eps
        # nn.Parameter(torch.ones(1)) / nn.Parameter(torch.zeros(1))
        self.affine_weight = jnp.ones((1,), dtype=jnp.float32)
        self.affine_bias = jnp.zeros((1,), dtype=jnp.float32)
        # TODO(synk): custom `mapper` / `mapper_inv` callables are identity here; a
        # non-identity nonlinearity would need to be traced into the kernel bodies.

    def __call__(self, x, mode: str):
        if mode == "norm":
            return _normalize(x, self.tail, self.affine_weight, self.affine_bias)
        elif mode == "denorm":
            return _denormalize(x, self.affine_weight, self.affine_bias)
        else:
            raise NotImplementedError(mode)


# ---------------------------------------------------------------------------
# Reference (pure JAX) for verification
# ---------------------------------------------------------------------------
def _ref_forward(x, mode, tail, weight, bias, eps=EPS):
    if mode == "norm":
        return x[:, -tail:] * weight[0] + bias[0]
    elif mode == "denorm":
        return (x - bias[0]) / (weight[0] + eps * eps)
    raise NotImplementedError(mode)


if __name__ == "__main__":
    key = jax.random.PRNGKey(0)

    # ---- small shapes matching the module convention (fused-fallback norm path) ----
    batch, seq, tail = 2, 16, 8
    x = jax.random.normal(key, (batch, seq), dtype=jnp.float32)

    model = TransformNoZ(tail=tail)
    model.affine_weight = jnp.array([1.5], dtype=jnp.float32)
    model.affine_bias = jnp.array([0.25], dtype=jnp.float32)

    y_norm = jax.block_until_ready(model(x, "norm"))
    y_norm_ref = _ref_forward(x, "norm", tail, model.affine_weight, model.affine_bias)
    assert y_norm.shape == (batch, tail)
    assert jnp.allclose(y_norm, y_norm_ref, rtol=1e-6, atol=1e-6), "norm mismatch"

    y_denorm = jax.block_until_ready(model(y_norm, "denorm"))
    y_denorm_ref = _ref_forward(y_norm_ref, "denorm", tail,
                                model.affine_weight, model.affine_bias)
    assert y_denorm.shape == (batch, tail)
    assert jnp.allclose(y_denorm, y_denorm_ref, rtol=1e-5, atol=1e-6), "denorm mismatch"

    # ---- lane-dense repack: denorm and tail==seq norm on a (16, 8) -> (1, 128) slab ----
    xd = jax.random.normal(jax.random.PRNGKey(1), (16, 8), dtype=jnp.float32)
    yd = jax.block_until_ready(_denormalize(xd, model.affine_weight, model.affine_bias))
    yd_ref = _ref_forward(xd, "denorm", tail, model.affine_weight, model.affine_bias)
    assert yd.shape == xd.shape
    assert jnp.allclose(yd, yd_ref, rtol=1e-5, atol=1e-6), "lane-dense denorm mismatch"
    yn = jax.block_until_ready(_normalize(xd, 8, model.affine_weight, model.affine_bias))
    yn_ref = _ref_forward(xd, "norm", 8, model.affine_weight, model.affine_bias)
    assert jnp.allclose(yn, yn_ref, rtol=1e-6, atol=1e-6), "lane-dense norm mismatch"

    # ---- narrowed-DMA norm path (tail and seq-tail multiples of 128), multi-block grid ----
    b3, s3, t3 = 24, 256, 128
    x3 = jax.random.normal(jax.random.PRNGKey(2), (b3, s3), dtype=jnp.float32)
    w3 = jnp.array([0.75], dtype=jnp.float32)
    bb3 = jnp.array([-0.1], dtype=jnp.float32)
    y3 = jax.block_until_ready(_normalize(x3, t3, w3, bb3, tile_rows=8))   # grid=(3, 1)
    y3_ref = _ref_forward(x3, "norm", t3, w3, bb3)
    assert y3.shape == (b3, t3)
    assert jnp.allclose(y3, y3_ref, rtol=1e-6, atol=1e-6), "narrowed norm mismatch"
    z3 = jax.block_until_ready(_denormalize(y3, w3, bb3, tile_rows=8))     # grid=(3,)
    z3_ref = _ref_forward(y3_ref, "denorm", t3, w3, bb3)
    assert jnp.allclose(z3, z3_ref, rtol=1e-5, atol=1e-6), "tiled denorm mismatch"

    # ---- narrowed path with column block < tail and auto row tiling (>= 4 grid steps) ----
    b4, s4, t4 = 40, 384, 256
    x4 = jax.random.normal(jax.random.PRNGKey(3), (b4, s4), dtype=jnp.float32)
    y4 = jax.block_until_ready(_normalize(x4, t4, w3, bb3))                # grid=(5, 2)
    y4_ref = _ref_forward(x4, "norm", t4, w3, bb3)
    assert y4.shape == (b4, t4)
    assert jnp.allclose(y4, y4_ref, rtol=1e-6, atol=1e-6), "narrowed (cb<tail) norm mismatch"

    print("KERNEL_OK")
</pallas_src>

<mosaic_0001>
module attributes {stable_mosaic.version = 11 : i64} {
  func.func @_norm_tail_fused_kernel(%arg0: i32, %arg1: memref<1xf32, #tpu.memory_space<smem>>, %arg2: memref<1xf32, #tpu.memory_space<smem>>, %arg3: memref<2x16xf32, #tpu.memory_space<vmem>>, %arg4: memref<2x8xf32, #tpu.memory_space<vmem>>) attributes {dimension_semantics = [#tpu.dimension_semantics<parallel>], iteration_bounds = array<i64: 1>, scalar_prefetch = 0 : i64, scratch_operands = 0 : i64, tpu.core_type = #tpu.core_type<tc>, window_params = [{transform_indices = @transform_0, window_bounds = array<i64: 1>}, {transform_indices = @transform_1, window_bounds = array<i64: 1>}, {transform_indices = @transform_2, window_bounds = array<i64: 2, 16>}, {transform_indices = @transform_3, window_bounds = array<i64: 2, 8>}]} {
    %c0 = arith.constant 0 : index
    %c8 = arith.constant 8 : index
    %0 = vector.load %arg3[%c0, %c8] : memref<2x16xf32, #tpu.memory_space<vmem>>, vector<2x8xf32>
    %c0_0 = arith.constant 0 : index
    %1 = memref.load %arg1[%c0_0] : memref<1xf32, #tpu.memory_space<smem>>
    %2 = vector.broadcast %1 : f32 to vector<2x8xf32>
    %3 = arith.mulf %0, %2 : vector<2x8xf32>
    %c0_1 = arith.constant 0 : index
    %4 = memref.load %arg2[%c0_1] : memref<1xf32, #tpu.memory_space<smem>>
    %5 = vector.broadcast %4 : f32 to vector<2x8xf32>
    %6 = arith.addf %3, %5 : vector<2x8xf32>
    %c0_2 = arith.constant 0 : index
    %c0_3 = arith.constant 0 : index
    %7 = vector.load %arg4[%c0_2, %c0_3] : memref<2x8xf32, #tpu.memory_space<vmem>>, vector<2x8xf32>
    tpu.vector_store %arg4[%c0_2, %c0_3], %6 {strides = array<i32>} : memref<2x8xf32, #tpu.memory_space<vmem>>, vector<2x8xf32>,
    return
  }
  func.func @transform_0(%arg0: i32) -> i32 {
    %c0_i32 = arith.constant 0 : i32
    %c0_i32_0 = arith.constant 0 : i32
    return %c0_i32 : i32
  }
  func.func @transform_1(%arg0: i32) -> i32 {
    %c0_i32 = arith.constant 0 : i32
    %c0_i32_0 = arith.constant 0 : i32
    return %c0_i32 : i32
  }
  func.func @transform_2(%arg0: i32) -> (i32, i32) {
    %c0_i32 = arith.constant 0 : i32
    %c0_i32_0 = arith.constant 0 : i32
    return %arg0, %c0_i32 : i32, i32
  }
  func.func @transform_3(%arg0: i32) -> (i32, i32) {
    %c0_i32 = arith.constant 0 : i32
    %c0_i32_0 = arith.constant 0 : i32
    return %arg0, %c0_i32 : i32, i32
  }
}

</mosaic_0001>

<bundles_post_ra>
// kernel: tpu_custom_call.1
= control target key start
LH: loop header
LB: loop body
LE: loop exit
PB: predicated region body
PF: predicated region fallthrough
CT: control target
= control target key end

     0   :  { %s108_s0 = inlined_call_operand.<no memory space> [shape: f32[1], index: 0, kind: input, shape index: {}]   ;;  %s109_s1 = inlined_call_operand.<no memory space> [shape: f32[1], index: 1, kind: input, shape index: {}]   ;;  %s110_s2 = inlined_call_operand.vmem [shape: f32[2,16], index: 2, kind: input, shape index: {}]   ;;  %s111_s3 = inlined_call_operand.hbm [shape: f32[2,8], index: 3, kind: output, shape index: {}]  }
   0x1   :  { %v17_v0 = vld [vmem:[%s110_s2] sm:$0x3]  ;;  %v19_v1 = vstv %s108_s0  ;;  %v22_v2 = vstv %s109_s1 }
   0x2   :  { %10 = vsyncpa [#allocation5], 0  ;;  %v20_v3 = vmul.f32 %v19_v1, %v17_v0  ;;  %s74_s18 = smov 120   ;;  %s75_s19 = smov [#allocation4]   ;;  %vm28_vm0 = vcmask 58368  }
   0x3   :  { %s35_s20 = sshll.u32 %s75_s19, 4  ;;  %s37_s23 = sshll.u32 %s111_s3, 4  ;;  %s36_s20 = int_to_ptr.vmem [resolvable:$true] %s35_s20  ;;  %s38_s23 = int_to_ptr.hbm [resolvable:$true] %s37_s23 }
   0x4   :  { %v23_v4 = vadd.f32 %v22_v2, %v20_v3 }
   0x6   :  { %25 = vrot.lane.b32.xlu0 %v23_v4, %s74_s18 }
  0x78   :  { %v26_v5 = vpop.permute.xlu0 %25 }
  0x79   :  { %29 = vst.msk [vmem:[#allocation4] sm:$0x3] %vm28_vm0, %v26_v5 }
  0x7a   :  { %40 = dma.vmem_to_hbm [thread:$0]  %s36_s20, 32, %s38_s23, [#allocation5]  }
  0x7b   :  { %72 = dma.done.wait [#allocation5], 32  }
  0x7c   :  { %73 = vsyncadd [#allocation5], 4294967264 }
  0x7d   :  { %45 = vsyncpa [#allocation5], 1 }

</bundles_post_ra>
